<compile_context>
chip_gen: v5e
topology: v5e:2x2
jax: 0.10.0
libtpu: 0.0.40
codegen_flags: <defaults>
</compile_context>

<pallas_src>
import jax
import jax.numpy as jnp
from jax.experimental import pallas as pl
from jax.experimental.pallas import tpu as pltpu

_H_CHUNK = 512                  # hidden-dim chunk -> bounds live f32 (hc, TN) slab in VMEM
_TARGET_STEP_BYTES = 4 << 20    # ~4 MiB of x+out HBM traffic per grid step (amortize step cost)
_VMEM_FRACTION = 0.8            # use <= 80% of physical VMEM (headroom for compiler scratch)


def _cdiv(a, b):
    return (a + b - 1) // b


def _mlp_kernel(x_ref, w1_ref, b1_ref, w2_ref, b2_ref, o_ref):
    # x_ref:  (C_in, TN)   one (batch, N-tile) slab, channels-major
    # w1_ref: (H, C_in)    b1_ref: (H, 1)      (f32 biases)
    # w2_ref: (C_out, H)   b2_ref: (C_out, 1)
    # o_ref:  (C_out, TN)
    H = w1_ref.shape[0]
    c_out, tn = o_ref.shape
    acc = jnp.broadcast_to(b2_ref[...].astype(jnp.float32), (c_out, tn))
    # Chunk the hidden dim so the live f32 hidden slab is (<=_H_CHUNK, TN), not (H, TN).
    for h0 in range(0, H, _H_CHUNK):
        hc = min(_H_CHUNK, H - h0)
        h = jnp.dot(w1_ref[h0:h0 + hc, :], x_ref[...],
                    preferred_element_type=jnp.float32) + b1_ref[h0:h0 + hc, :]
        h = jnp.clip(h, 0.0, 6.0)  # ReLU6
        # TODO(synk): Dropout(p=0.2) is eval-mode identity (no RNG mask) - inference only.
        acc = acc + jnp.dot(w2_ref[:, h0:h0 + hc], h.astype(w2_ref.dtype),
                            preferred_element_type=jnp.float32)
    o_ref[...] = acc.astype(o_ref.dtype)


def mlp_pallas(x, w1, b1, w2, b2, *, io_dtype=None):
    """x: (B, C_in, N). Returns (B, C_out, N) in x's (possibly cast) dtype.

    w1: (H, C_in),    b1: (H,)       -- nn.Linear(in_features, hidden_features)
    w2: (C_out, H, 1), b2: (C_out,)  -- nn.Conv1d(hidden_features, out_features, 1)
    io_dtype: optional activation/weight dtype (e.g. jnp.bfloat16) to halve HBM
              traffic on v6e/v7x; accumulation stays f32 in-kernel.
    """
    B, C_in, N = x.shape
    H = w1.shape[0]
    C_out = w2.shape[0]

    if io_dtype is not None:
        x = x.astype(io_dtype)
        w1 = w1.astype(io_dtype)
        w2 = w2.astype(io_dtype)
    out_dtype = x.dtype

    # Tiny param-side prep only (no transpose/reshape of the big activations).
    w2_m = w2[:, :, 0]                            # (C_out, H)
    b1_c = b1.astype(jnp.float32).reshape(H, 1)   # column vectors broadcast over N
    b2_c = b2.astype(jnp.float32).reshape(C_out, 1)

    itemsize = jnp.dtype(x.dtype).itemsize
    hc = min(H, _H_CHUNK)

    # ---- generation-aware VMEM budget ---------------------------------------
    try:
        vmem_cap = int(pltpu.get_tpu_info().vmem_capacity_bytes)
    except Exception:
        vmem_cap = 64 * 1024 * 1024               # conservative (v7x per-core VMEM)
    vmem_budget = int(_VMEM_FRACTION * vmem_cap)

    # VMEM footprint model (bytes):
    #   fixed:   single-buffered weights/biases (constant index_map -> Buffered(1))
    #   per-col: double-buffered x/out tiles + f32 hidden chunk + f32 accumulator
    fixed_bytes = (H * C_in + C_out * H) * itemsize + (H + C_out) * 4
    per_col_bytes = 2 * (C_in + C_out) * itemsize + (hc + C_out) * 4
    per_col_hbm = (C_in + C_out) * itemsize

    usable = max(0, vmem_budget * 2 // 3 - fixed_bytes)     # ~1.5x headroom
    tn_fit = max(128, (usable // per_col_bytes) // 128 * 128)
    tn_target = max(128, (_TARGET_STEP_BYTES // per_col_hbm) // 128 * 128)

    if N < 128:
        # Single block; block dim == full array dim is legal.
        # TODO(synk): small-N path uses masked (non lane-dense) stores; a token-major
        # layout would fix that, but production shapes are expected to have N >= 128.
        TN = N
    else:
        TN = max(128, min(tn_fit, tn_target, (N // 128) * 128))

    n_tiles = _cdiv(N, TN)
    # v7x megacore balance: both TensorCores shard the 'parallel' grid axes, so prefer
    # an even total step count when the grid is small and B is odd.
    if B % 2 == 1 and n_tiles % 2 == 1 and n_tiles < 8 and TN > 128:
        for t in range(TN - 128, 127, -128):
            if _cdiv(N, t) % 2 == 0:
                TN = t
                n_tiles = _cdiv(N, t)
                break
    grid = (B, n_tiles)

    footprint = fixed_bytes + per_col_bytes * TN
    vmem_limit = int(min(vmem_budget, max(footprint * 3 // 2, 16 * 1024 * 1024)))

    cost = pl.CostEstimate(
        flops=2 * B * N * (C_in * H + H * C_out),
        transcendentals=0,
        bytes_accessed=(B * (C_in + C_out) * N) * itemsize
        + (H * C_in + C_out * H) * itemsize + (H + C_out) * 4,
    )

    def _build(const_mode):
        extra = {} if const_mode is None else {"pipeline_mode": const_mode}

        def const_spec(shape):
            return pl.BlockSpec(shape, lambda b, n: (0, 0), **extra)

        return pl.pallas_call(
            _mlp_kernel,
            out_shape=jax.ShapeDtypeStruct((B, C_out, N), out_dtype),
            grid_spec=pltpu.PrefetchScalarGridSpec(
                num_scalar_prefetch=0,
                grid=grid,
                in_specs=[
                    # batch dim squeezed out of the kernel view
                    pl.BlockSpec((None, C_in, TN), lambda b, n: (b, 0, n)),
                    const_spec((H, C_in)),
                    const_spec((H, 1)),
                    const_spec((C_out, H)),
                    const_spec((C_out, 1)),
                ],
                out_specs=pl.BlockSpec((None, C_out, TN), lambda b, n: (b, 0, n)),
            ),
            compiler_params=pltpu.CompilerParams(
                dimension_semantics=("parallel", "parallel"),
                vmem_limit_bytes=vmem_limit,
            ),
            cost_estimate=cost,
        )

    args = (x, w1, b1_c, w2_m, b2_c)
    try:
        # Constant-index operands single-buffered -> frees VMEM for bigger TN.
        return _build(pl.Buffered(1))(*args)
    except Exception:
        # Fallback for jax versions that reject pipeline_mode on pallas_call specs.
        return _build(None)(*args)


def mlp_reference(x, w1, b1, w2, b2):
    """Pure-JAX reference mirroring the PyTorch forward (eval mode)."""
    h = jnp.einsum("bcn,hc->bhn", x, w1) + b1[None, :, None]
    h = jnp.clip(h, 0.0, 6.0)
    y = jnp.einsum("bhn,oh->bon", h, w2[:, :, 0]) + b2[None, :, None]
    return y


if __name__ == "__main__":
    key = jax.random.PRNGKey(0)

    def make_params(C_in, H, C_out, k):
        k1, kb1, k2, kb2 = jax.random.split(k, 4)
        w1 = jax.random.normal(k1, (H, C_in), dtype=jnp.float32) * 0.1
        b1 = jax.random.normal(kb1, (H,), dtype=jnp.float32) * 0.1
        w2 = jax.random.normal(k2, (C_out, H, 1), dtype=jnp.float32) * 0.1
        b2 = jax.random.normal(kb2, (C_out,), dtype=jnp.float32) * 0.1
        return w1, b1, w2, b2

    B, C_in, H = 2, 16, 32
    C_out = C_in
    kx1, kx2, kx3, kp = jax.random.split(key, 4)
    w1, b1, w2, b2 = make_params(C_in, H, C_out, kp)

    # Case 1: tiny N (< 128) -> single-block fallback path.
    x1 = jax.random.normal(kx1, (B, C_in, 8), dtype=jnp.float32)
    out1 = jax.block_until_ready(mlp_pallas(x1, w1, b1, w2, b2))
    ref1 = mlp_reference(x1, w1, b1, w2, b2)
    assert out1.shape == ref1.shape, out1.shape
    assert jnp.allclose(out1, ref1, atol=1e-5, rtol=1e-5), "mismatch vs reference (small N)"

    # Case 2: N a multiple of 128 -> lane-dense, exact tiling.
    x2 = jax.random.normal(kx2, (B, C_in, 384), dtype=jnp.float32)
    out2 = jax.block_until_ready(mlp_pallas(x2, w1, b1, w2, b2))
    ref2 = mlp_reference(x2, w1, b1, w2, b2)
    assert out2.shape == ref2.shape, out2.shape
    assert jnp.allclose(out2, ref2, atol=1e-5, rtol=1e-5), "mismatch vs reference (aligned N)"

    # Case 3: N not divisible by 128 -> fixed TN with a masked partial last block.
    x3 = jax.random.normal(kx3, (B, C_in, 200), dtype=jnp.float32)
    out3 = jax.block_until_ready(mlp_pallas(x3, w1, b1, w2, b2))
    ref3 = mlp_reference(x3, w1, b1, w2, b2)
    assert out3.shape == ref3.shape, out3.shape
    assert jnp.allclose(out3, ref3, atol=1e-5, rtol=1e-5), "mismatch vs reference (ragged N)"

    # Case 4: optional bf16 HBM I/O path (f32 accumulation in-kernel), loose tolerance.
    out4 = jax.block_until_ready(mlp_pallas(x2, w1, b1, w2, b2, io_dtype=jnp.bfloat16))
    assert out4.dtype == jnp.bfloat16
    assert jnp.allclose(out4.astype(jnp.float32), ref2, atol=1e-1, rtol=5e-2), \
        "mismatch vs reference (bf16 I/O)"

    print("KERNEL_OK")
</pallas_src>

<mosaic_0001>
module attributes {stable_mosaic.version = 11 : i64} {
  func.func @_mlp_kernel(%arg0: i32, %arg1: i32, %arg2: memref<1x16x8xf32, #tpu.memory_space<vmem>>, %arg3: memref<32x16xf32, #tpu.memory_space<vmem>>, %arg4: memref<32x1xf32, #tpu.memory_space<vmem>>, %arg5: memref<16x32xf32, #tpu.memory_space<vmem>>, %arg6: memref<16x1xf32, #tpu.memory_space<vmem>>, %arg7: memref<1x16x8xf32, #tpu.memory_space<vmem>>) attributes {dimension_semantics = [#tpu.dimension_semantics<parallel>, #tpu.dimension_semantics<parallel>], iteration_bounds = array<i64: 2, 1>, scalar_prefetch = 0 : i64, scratch_operands = 0 : i64, tpu.core_type = #tpu.core_type<tc>, window_params = [{transform_indices = @transform_0, window_bounds = array<i64: 1, 16, 8>}, {pipeline_mode = #tpu.pipeline_mode<synchronous>, transform_indices = @transform_1, window_bounds = array<i64: 32, 16>}, {pipeline_mode = #tpu.pipeline_mode<synchronous>, transform_indices = @transform_2, window_bounds = array<i64: 32, 1>}, {pipeline_mode = #tpu.pipeline_mode<synchronous>, transform_indices = @transform_3, window_bounds = array<i64: 16, 32>}, {pipeline_mode = #tpu.pipeline_mode<synchronous>, transform_indices = @transform_4, window_bounds = array<i64: 16, 1>}, {transform_indices = @transform_5, window_bounds = array<i64: 1, 16, 8>}]} {
    %c0 = arith.constant 0 : index
    %c0_0 = arith.constant 0 : index
    %0 = vector.load %arg6[%c0, %c0_0] : memref<16x1xf32, #tpu.memory_space<vmem>>, vector<16x1xf32>
    %1 = vector.shape_cast %0 : vector<16x1xf32> to vector<16x1xf32>
    %2 = vector.broadcast %1 : vector<16x1xf32> to vector<16x8xf32>
    %c0_1 = arith.constant 0 : index
    %c0_2 = arith.constant 0 : index
    %3 = vector.load %arg3[%c0_1, %c0_2] : memref<32x16xf32, #tpu.memory_space<vmem>>, vector<32x16xf32>
    %c0_3 = arith.constant 0 : index
    %c0_4 = arith.constant 0 : index
    %c0_5 = arith.constant 0 : index
    %4 = vector.load %arg2[%c0_3, %c0_4, %c0_5] : memref<1x16x8xf32, #tpu.memory_space<vmem>>, vector<1x16x8xf32>
    %5 = vector.shape_cast %4 : vector<1x16x8xf32> to vector<16x8xf32>
    %cst = arith.constant dense<0.000000e+00> : vector<32x8xf32>
    %6 = tpu.matmul %3, %5, %cst {dimension_numbers = #tpu.dot_dimension_numbers<[1], [0], [0], [1], [0, 0, 1, 1], [], []>} : vector<32x16xf32>, vector<16x8xf32>, vector<32x8xf32> -> vector<32x8xf32>
    %c0_6 = arith.constant 0 : index
    %c0_7 = arith.constant 0 : index
    %7 = vector.load %arg4[%c0_6, %c0_7] : memref<32x1xf32, #tpu.memory_space<vmem>>, vector<32x1xf32>
    %8 = vector.broadcast %7 : vector<32x1xf32> to vector<32x8xf32>
    %9 = arith.addf %6, %8 : vector<32x8xf32>
    %cst_8 = arith.constant 0.000000e+00 : f32
    %cst_9 = arith.constant 6.000000e+00 : f32
    %10 = vector.broadcast %cst_8 : f32 to vector<32x8xf32>
    %11 = arith.maximumf %10, %9 : vector<32x8xf32>
    %12 = vector.broadcast %cst_9 : f32 to vector<32x8xf32>
    %13 = arith.minimumf %12, %11 : vector<32x8xf32>
    %c0_10 = arith.constant 0 : index
    %c0_11 = arith.constant 0 : index
    %14 = vector.load %arg5[%c0_10, %c0_11] : memref<16x32xf32, #tpu.memory_space<vmem>>, vector<16x32xf32>
    %cst_12 = arith.constant dense<0.000000e+00> : vector<16x8xf32>
    %15 = tpu.matmul %14, %13, %cst_12 {dimension_numbers = #tpu.dot_dimension_numbers<[1], [0], [0], [1], [0, 0, 1, 1], [], []>} : vector<16x32xf32>, vector<32x8xf32>, vector<16x8xf32> -> vector<16x8xf32>
    %16 = arith.addf %2, %15 : vector<16x8xf32>
    %c0_13 = arith.constant 0 : index
    %c0_14 = arith.constant 0 : index
    %c0_15 = arith.constant 0 : index
    %17 = vector.load %arg7[%c0_13, %c0_14, %c0_15] : memref<1x16x8xf32, #tpu.memory_space<vmem>>, vector<1x16x8xf32>
    %18 = vector.shape_cast %17 : vector<1x16x8xf32> to vector<16x8xf32>
    %19 = vector.shape_cast %16 : vector<16x8xf32> to vector<1x16x8xf32>
    tpu.vector_store %arg7[%c0_13, %c0_14, %c0_15], %19 {strides = array<i32>} : memref<1x16x8xf32, #tpu.memory_space<vmem>>, vector<1x16x8xf32>,
    return
  }
  func.func @transform_0(%arg0: i32, %arg1: i32) -> (i32, i32, i32) {
    %c0_i32 = arith.constant 0 : i32
    %c0_i32_0 = arith.constant 0 : i32
    return %arg0, %c0_i32, %arg1 : i32, i32, i32
  }
  func.func @transform_1(%arg0: i32, %arg1: i32) -> (i32, i32) {
    %c0_i32 = arith.constant 0 : i32
    %c0_i32_0 = arith.constant 0 : i32
    %c0_i32_1 = arith.constant 0 : i32
    return %c0_i32, %c0_i32_0 : i32, i32
  }
  func.func @transform_2(%arg0: i32, %arg1: i32) -> (i32, i32) {
    %c0_i32 = arith.constant 0 : i32
    %c0_i32_0 = arith.constant 0 : i32
    %c0_i32_1 = arith.constant 0 : i32
    return %c0_i32, %c0_i32_0 : i32, i32
  }
  func.func @transform_3(%arg0: i32, %arg1: i32) -> (i32, i32) {
    %c0_i32 = arith.constant 0 : i32
    %c0_i32_0 = arith.constant 0 : i32
    %c0_i32_1 = arith.constant 0 : i32
    return %c0_i32, %c0_i32_0 : i32, i32
  }
  func.func @transform_4(%arg0: i32, %arg1: i32) -> (i32, i32) {
    %c0_i32 = arith.constant 0 : i32
    %c0_i32_0 = arith.constant 0 : i32
    %c0_i32_1 = arith.constant 0 : i32
    return %c0_i32, %c0_i32_0 : i32, i32
  }
  func.func @transform_5(%arg0: i32, %arg1: i32) -> (i32, i32, i32) {
    %c0_i32 = arith.constant 0 : i32
    %c0_i32_0 = arith.constant 0 : i32
    return %arg0, %c0_i32, %arg1 : i32, i32, i32
  }
}

module attributes {stable_mosaic.version = 11 : i64} {
  func.func @_mlp_kernel(%arg0: i32, %arg1: i32, %arg2: memref<1x16x8xf32, #tpu.memory_space<vmem>>, %arg3: memref<32x16xf32, #tpu.memory_space<vmem>>, %arg4: memref<32x1xf32, #tpu.memory_space<vmem>>, %arg5: memref<16x32xf32, #tpu.memory_space<vmem>>, %arg6: memref<16x1xf32, #tpu.memory_space<vmem>>, %arg7: memref<1x16x8xf32, #tpu.memory_space<vmem>>) attributes {dimension_semantics = [#tpu.dimension_semantics<parallel>, #tpu.dimension_semantics<parallel>], iteration_bounds = array<i64: 2, 1>, scalar_prefetch = 0 : i64, scratch_operands = 0 : i64, tpu.core_type = #tpu.core_type<tc>, window_params = [{transform_indices = @transform_0, window_bounds = array<i64: 1, 16, 8>}, {pipeline_mode = #tpu.pipeline_mode<synchronous>, transform_indices = @transform_1, window_bounds = array<i64: 32, 16>}, {pipeline_mode = #tpu.pipeline_mode<synchronous>, transform_indices = @transform_2, window_bounds = array<i64: 32, 1>}, {pipeline_mode = #tpu.pipeline_mode<synchronous>, transform_indices = @transform_3, window_bounds = array<i64: 16, 32>}, {pipeline_mode = #tpu.pipeline_mode<synchronous>, transform_indices = @transform_4, window_bounds = array<i64: 16, 1>}, {transform_indices = @transform_5, window_bounds = array<i64: 1, 16, 8>}]} {
    %c0 = arith.constant 0 : index
    %c0_0 = arith.constant 0 : index
    %0 = vector.load %arg6[%c0, %c0_0] : memref<16x1xf32, #tpu.memory_space<vmem>>, vector<16x1xf32>
    %1 = vector.shape_cast %0 : vector<16x1xf32> to vector<16x1xf32>
    %2 = vector.broadcast %1 : vector<16x1xf32> to vector<16x8xf32>
    %c0_1 = arith.constant 0 : index
    %c0_2 = arith.constant 0 : index
    %3 = vector.load %arg3[%c0_1, %c0_2] : memref<32x16xf32, #tpu.memory_space<vmem>>, vector<32x16xf32>
    %c0_3 = arith.constant 0 : index
    %c0_4 = arith.constant 0 : index
    %c0_5 = arith.constant 0 : index
    %4 = vector.load %arg2[%c0_3, %c0_4, %c0_5] : memref<1x16x8xf32, #tpu.memory_space<vmem>>, vector<1x16x8xf32>
    %5 = vector.shape_cast %4 : vector<1x16x8xf32> to vector<16x8xf32>
    %cst = arith.constant dense<0.000000e+00> : vector<32x8xf32>
    %6 = tpu.matmul %3, %5, %cst {dimension_numbers = #tpu.dot_dimension_numbers<[1], [0], [0], [1], [0, 0, 1, 1], [], []>} : vector<32x16xf32>, vector<16x8xf32>, vector<32x8xf32> -> vector<32x8xf32>
    %c0_6 = arith.constant 0 : index
    %c0_7 = arith.constant 0 : index
    %7 = vector.load %arg4[%c0_6, %c0_7] : memref<32x1xf32, #tpu.memory_space<vmem>>, vector<32x1xf32>
    %8 = vector.broadcast %7 : vector<32x1xf32> to vector<32x8xf32>
    %9 = arith.addf %6, %8 : vector<32x8xf32>
    %cst_8 = arith.constant 0.000000e+00 : f32
    %cst_9 = arith.constant 6.000000e+00 : f32
    %10 = vector.broadcast %cst_8 : f32 to vector<32x8xf32>
    %11 = arith.maximumf %10, %9 : vector<32x8xf32>
    %12 = vector.broadcast %cst_9 : f32 to vector<32x8xf32>
    %13 = arith.minimumf %12, %11 : vector<32x8xf32>
    %c0_10 = arith.constant 0 : index
    %c0_11 = arith.constant 0 : index
    %14 = vector.load %arg5[%c0_10, %c0_11] : memref<16x32xf32, #tpu.memory_space<vmem>>, vector<16x32xf32>
    %cst_12 = arith.constant dense<0.000000e+00> : vector<16x8xf32>
    %15 = tpu.matmul %14, %13, %cst_12 {dimension_numbers = #tpu.dot_dimension_numbers<[1], [0], [0], [1], [0, 0, 1, 1], [], []>} : vector<16x32xf32>, vector<32x8xf32>, vector<16x8xf32> -> vector<16x8xf32>
    %16 = arith.addf %2, %15 : vector<16x8xf32>
    %c0_13 = arith.constant 0 : index
    %c0_14 = arith.constant 0 : index
    %c0_15 = arith.constant 0 : index
    %17 = vector.load %arg7[%c0_13, %c0_14, %c0_15] : memref<1x16x8xf32, #tpu.memory_space<vmem>>, vector<1x16x8xf32>
    %18 = vector.shape_cast %17 : vector<1x16x8xf32> to vector<16x8xf32>
    %19 = vector.shape_cast %16 : vector<16x8xf32> to vector<1x16x8xf32>
    tpu.vector_store %arg7[%c0_13, %c0_14, %c0_15], %19 {strides = array<i32>} : memref<1x16x8xf32, #tpu.memory_space<vmem>>, vector<1x16x8xf32>,
    return
  }
  func.func @transform_0(%arg0: i32, %arg1: i32) -> (i32, i32, i32) {
    %c0_i32 = arith.constant 0 : i32
    %c0_i32_0 = arith.constant 0 : i32
    return %arg0, %c0_i32, %arg1 : i32, i32, i32
  }
  func.func @transform_1(%arg0: i32, %arg1: i32) -> (i32, i32) {
    %c0_i32 = arith.constant 0 : i32
    %c0_i32_0 = arith.constant 0 : i32
    %c0_i32_1 = arith.constant 0 : i32
    return %c0_i32, %c0_i32_0 : i32, i32
  }
  func.func @transform_2(%arg0: i32, %arg1: i32) -> (i32, i32) {
    %c0_i32 = arith.constant 0 : i32
    %c0_i32_0 = arith.constant 0 : i32
    %c0_i32_1 = arith.constant 0 : i32
    return %c0_i32, %c0_i32_0 : i32, i32
  }
  func.func @transform_3(%arg0: i32, %arg1: i32) -> (i32, i32) {
    %c0_i32 = arith.constant 0 : i32
    %c0_i32_0 = arith.constant 0 : i32
    %c0_i32_1 = arith.constant 0 : i32
    return %c0_i32, %c0_i32_0 : i32, i32
  }
  func.func @transform_4(%arg0: i32, %arg1: i32) -> (i32, i32) {
    %c0_i32 = arith.constant 0 : i32
    %c0_i32_0 = arith.constant 0 : i32
    %c0_i32_1 = arith.constant 0 : i32
    return %c0_i32, %c0_i32_0 : i32, i32
  }
  func.func @transform_5(%arg0: i32, %arg1: i32) -> (i32, i32, i32) {
    %c0_i32 = arith.constant 0 : i32
    %c0_i32_0 = arith.constant 0 : i32
    return %arg0, %c0_i32, %arg1 : i32, i32, i32
  }
}

</mosaic_0001>

<bundles_post_ra>
// kernel: tpu_custom_call.1
= control target key start
LH: loop header
LB: loop body
LE: loop exit
PB: predicated region body
PF: predicated region fallthrough
CT: control target
= control target key end

     0   :  { %s576_s18 = smov 0   ;;  %s578_s19 = smov 0   ;;  %s652_s0 = inlined_call_operand.vmem [shape: f32[2,16,8], index: 0, kind: input, shape index: {}]   ;;  %s653_s1 = inlined_call_operand.vmem [shape: f32[32,16], index: 1, kind: input, shape index: {}]   ;;  %s654_s2 = inlined_call_operand.vmem [shape: f32[32,1], index: 2, kind: input, shape index: {}]   ;;  %s655_s3 = inlined_call_operand.vmem [shape: f32[16,32], index: 3, kind: input, shape index: {}]   ;;  %s656_s4 = inlined_call_operand.vmem [shape: f32[16,1], index: 4, kind: input, shape index: {}]   ;;  %s657_s5 = inlined_call_operand.vmem [shape: f32[2,16,8], index: 5, kind: output, shape index: {}]  }
   0x1   :  { %s580_s20 = smov 0  }
   0x2 LB: > { %s27_s21 = sadd.s32 1, %s539_s19  ;;  %p472_p0 = scmp.ge.s32.totalorder %s543_s20, 1  ;;  %s543_s20 = sphi %s580_s20, %s15_s20   ;;  %s539_s19 = sphi %s578_s19, %s659_s19   ;;  %s535_s18 = sphi %s576_s18, %s658_s18  }
   0x3   : > { %p29_p1 = scmp.ge.s32.totalorder %s27_s21, 2  ;;  %p206_p2 = scmp.lt.s32.totalorder %s543_s20, 3 }
   0x5   : > { %s661_s21 = smov (%p29_p1, %s27_s21), 0  ;;  %p207_p3 = pnand %p472_p0, %p206_p2 }
   0x6   : > { %p240_p4 = scmp.lt.s32.totalorder (!%p207_p3), %s535_s18, 1 }
   0x7   : > { %210 = sbr.rel (%p207_p3) target bundleno = 307 (0x133), region = 40 }
   0xc   : > { %v545_v0 = vmov 0   ;;  %v277_v1 = vld [vmem:[%s654_s2 + $0x18] sm:$0xff]  ;;  %v275_v2 = vld [vmem:[%s654_s2 + $0x8] sm:$0xff]  ;;  %s663_s18 = smov (!%p240_p4, %s535_s18), 1  ;;  %v270_v5 = vld [vmem:[%s653_s1 + $0x10] sm:$0xff]  ;;  %vm298_vm0 = vcmask 130048  }
   0xd   : > { %518 = vset.pattern.permute.xlu0 %v545_v0  ;;  %519 = vset.pattern.permute.xlu1 %v545_v0  ;;  %s485_s26 = sshll.u32 %s663_s18, 4  ;;  %v268_v6 = vld [vmem:[%s653_s1] sm:$0xff]  ;;  %v276_v7 = vld [vmem:[%s654_s2 + $0x10] sm:$0xff]  ;;  %v271_v9 = vld [vmem:[%s653_s1 + $0x18] sm:$0xff]  ;;  %vm350_vm1 = vcmask 261120   ;;  %vm382_vm2 = vcmask 64512  }
   0xe   : > { %295 = vperm.xlu0 %518, %v277_v1   ;;  %285 = vperm.xlu1 %519, %v275_v2   ;;  %s247_s29 = scalar_lea.vmem %s652_s0, %s485_s26  ;;  %v274_v8 = vld [vmem:[%s654_s2] sm:$0xff]  ;;  %v269_v10 = vld [vmem:[%s653_s1 + $0x8] sm:$0xff]  ;;  %s255_s7 = scalar_lea.vmem %s657_s5, %s485_s26 }
   0xf   : > { %520 = vset.pattern.permute.xlu2 %v545_v0  ;;  %v273_v3 = vld [vmem:[%s247_s29 + $0x8] sm:$0xff]  ;;  %v272_v4 = vld [vmem:[%s247_s29] sm:$0xff] }
  0x10   : > { %487 = vmatpush.msra.mxu2 %v273_v3  ;;  %325 = vmatpush.msra.mxu0 %v273_v3  ;;  %v256_v11 = vld [vmem:[%s656_s4] sm:$0xff]  ;;  %v257_v14 = vld [vmem:[%s656_s4 + $0x8] sm:$0xff] }
  0x11   : > { %260 = vperm.xlu2 %520, %v256_v11   ;;  %v348_v33 = vld [vmem:[%s655_s3] sm:$0xff]  ;;  %v349_v34 = vld [vmem:[%s655_s3 + $0x8] sm:$0xff] }
  0x12   : > { %488 = vmatpush.msra.mxu2 %v272_v4  ;;  %326 = vmatpush.msra.mxu0 %v272_v4 }
  0x13   : > { %479 = vmatmul.msk.f32.vlgmr.msra.gmra.mxu2 %vm298_vm0, %v270_v5  ;;  %477 = vmatmul.msk.f32.vlgmr.msra.gmra.mxu0 %vm298_vm0, %v268_v6 }
  0x16   : > { %290 = vperm.xlu0 %518, %v276_v7   ;;  %280 = vperm.xlu1 %519, %v274_v8  }
  0x19   : > { %265 = vperm.xlu2 %520, %v257_v14  }
  0x1b   : > { %480 = vmatmul.msk.f32.gmra.mxu2 %vm298_vm0, %v271_v9  ;;  %478 = vmatmul.msk.f32.gmra.mxu0 %vm298_vm0, %v269_v10 }
  0x6b   : > { %v261_v35 = vpop.permute.xlu2 %260 }
  0x73   : > { %v266_v38 = vpop.permute.xlu2 %265 }
  0x80   : > { %v296_v12 = vpop.permute.xlu0 %295  ;;  %v286_v15 = vpop.permute.xlu1 %285 }
  0x88   : > { %v291_v17 = vpop.permute.xlu0 %290  ;;  %v281_v20 = vpop.permute.xlu1 %280 }
  0x90   : > { %v328_v13 = vpop.f32.mrf.mxu0 }
  0x91   : > { %v329_v25 = vadd.f32 %v328_v13, %v281_v20 }
  0x93   : > { %v340_v29 = vmax.f32 %v329_v25, 0.0 }
  0x95   : > { %v344_v32 = vmin.f32 %v340_v29, 6.0 }
  0x96   : > { %v334_v16 = vpop.f32.mrf.mxu2 }
  0x97   : > { %v335_v19 = vadd.f32 %v334_v16, %v291_v17 }
  0x98   : > { %v331_v18 = vpop.f32.mrf.mxu0 }
  0x99   : > { %v332_v22 = vadd.f32 %v331_v18, %v286_v15  ;;  %v342_v24 = vmax.f32 %v335_v19, 0.0 }
  0x9b   : > { %v341_v27 = vmax.f32 %v332_v22, 0.0  ;;  %v346_v30 = vmin.f32 %v342_v24, 6.0 }
  0x9d   : > { %v345_v31 = vmin.f32 %v341_v27, 6.0 }
  0x9e   : > { %v337_v21 = vpop.f32.mrf.mxu2 }
  0x9f   : > { %v338_v23 = vadd.f32 %v337_v21, %v296_v12 }
  0xa1   : > { %v343_v26 = vmax.f32 %v338_v23, 0.0 }
  0xa3   : > { %v347_v28 = vmin.f32 %v343_v26, 6.0 }
  0xa5   : > { %369 = vmatpush.msra.mxu1 %v347_v28  ;;  %489 = vmatpush.msra.mxu3 %v347_v28 }
  0xa7   : > { %370 = vmatpush.msra.mxu1 %v346_v30  ;;  %490 = vmatpush.msra.mxu3 %v346_v30 }
  0xa9   : > { %371 = vmatpush.msra.mxu1 %v345_v31  ;;  %491 = vmatpush.msra.mxu3 %v345_v31 }
  0xab   : > { %372 = vmatpush.msra.mxu1 %v344_v32  ;;  %492 = vmatpush.msra.mxu3 %v344_v32 }
  0xac   : > { %481 = vmatmul.msk.f32.vlgmr.msra.gmra.mxu1 %vm350_vm1, %v348_v33  ;;  %482 = vmatmul.msk.f32.vlgmr.msra.gmra.mxu3 %vm350_vm1, %v349_v34 }
 0x129   : > { %v374_v36 = vpop.f32.mrf.mxu1 }
 0x12a   : > { %v380_v37 = vadd.f32 %v374_v36, %v261_v35 }
 0x12c   : > { %383 = vst.msk [vmem:[%s255_s7] sm:$0xff] %vm382_vm2, %v380_v37 }
 0x12f   : > { %v377_v39 = vpop.f32.mrf.mxu3 }
 0x130   : > { %v381_v40 = vadd.f32 %v377_v39, %v266_v38 }
 0x132   : > { %384 = vst.msk [vmem:[%s255_s7 + $0x8] sm:$0xff] %vm382_vm2, %v381_v40 }
 0x133 PF: > { %s15_s20 = sadd.s32 1, %s543_s20   ;;  %s658_s18 = smov %s539_s19 }
 0x134   : > { %p12_p5 = scmp.ge.s32.totalorder %s15_s20, 4   ;;  %s659_s19 = smov %s661_s21 }
 0x136   :  { %14 = sbr.rel (!%p12_p5) target bundleno = 2 (0x2), region = 70 }

// kernel: tpu_custom_call.1
= control target key start
LH: loop header
LB: loop body
LE: loop exit
PB: predicated region body
PF: predicated region fallthrough
CT: control target
= control target key end

     0   :  { %s576_s18 = smov 0   ;;  %s578_s19 = smov 0   ;;  %s652_s0 = inlined_call_operand.vmem [shape: f32[2,16,8], index: 0, kind: input, shape index: {}]   ;;  %s653_s1 = inlined_call_operand.vmem [shape: f32[32,16], index: 1, kind: input, shape index: {}]   ;;  %s654_s2 = inlined_call_operand.vmem [shape: f32[32,1], index: 2, kind: input, shape index: {}]   ;;  %s655_s3 = inlined_call_operand.vmem [shape: f32[16,32], index: 3, kind: input, shape index: {}]   ;;  %s656_s4 = inlined_call_operand.vmem [shape: f32[16,1], index: 4, kind: input, shape index: {}]   ;;  %s657_s5 = inlined_call_operand.vmem [shape: f32[2,16,8], index: 5, kind: output, shape index: {}]  }
   0x1   :  { %s580_s20 = smov 0  }
   0x2 LB: > { %s27_s21 = sadd.s32 1, %s539_s19  ;;  %p472_p0 = scmp.ge.s32.totalorder %s543_s20, 1  ;;  %s543_s20 = sphi %s580_s20, %s15_s20   ;;  %s539_s19 = sphi %s578_s19, %s659_s19   ;;  %s535_s18 = sphi %s576_s18, %s658_s18  }
   0x3   : > { %p29_p1 = scmp.ge.s32.totalorder %s27_s21, 2  ;;  %p206_p2 = scmp.lt.s32.totalorder %s543_s20, 3 }
   0x5   : > { %s661_s21 = smov (%p29_p1, %s27_s21), 0  ;;  %p207_p3 = pnand %p472_p0, %p206_p2 }
   0x6   : > { %p240_p4 = scmp.lt.s32.totalorder (!%p207_p3), %s535_s18, 1 }
   0x7   : > { %210 = sbr.rel (%p207_p3) target bundleno = 307 (0x133), region = 40 }
   0xc   : > { %v545_v0 = vmov 0   ;;  %v277_v1 = vld [vmem:[%s654_s2 + $0x18] sm:$0xff]  ;;  %v275_v2 = vld [vmem:[%s654_s2 + $0x8] sm:$0xff]  ;;  %s663_s18 = smov (!%p240_p4, %s535_s18), 1  ;;  %v270_v5 = vld [vmem:[%s653_s1 + $0x10] sm:$0xff]  ;;  %vm298_vm0 = vcmask 130048  }
   0xd   : > { %518 = vset.pattern.permute.xlu0 %v545_v0  ;;  %519 = vset.pattern.permute.xlu1 %v545_v0  ;;  %s485_s26 = sshll.u32 %s663_s18, 4  ;;  %v268_v6 = vld [vmem:[%s653_s1] sm:$0xff]  ;;  %v276_v7 = vld [vmem:[%s654_s2 + $0x10] sm:$0xff]  ;;  %v271_v9 = vld [vmem:[%s653_s1 + $0x18] sm:$0xff]  ;;  %vm350_vm1 = vcmask 261120   ;;  %vm382_vm2 = vcmask 64512  }
   0xe   : > { %295 = vperm.xlu0 %518, %v277_v1   ;;  %285 = vperm.xlu1 %519, %v275_v2   ;;  %s247_s29 = scalar_lea.vmem %s652_s0, %s485_s26  ;;  %v274_v8 = vld [vmem:[%s654_s2] sm:$0xff]  ;;  %v269_v10 = vld [vmem:[%s653_s1 + $0x8] sm:$0xff]  ;;  %s255_s7 = scalar_lea.vmem %s657_s5, %s485_s26 }
   0xf   : > { %520 = vset.pattern.permute.xlu2 %v545_v0  ;;  %v273_v3 = vld [vmem:[%s247_s29 + $0x8] sm:$0xff]  ;;  %v272_v4 = vld [vmem:[%s247_s29] sm:$0xff] }
  0x10   : > { %487 = vmatpush.msra.mxu2 %v273_v3  ;;  %325 = vmatpush.msra.mxu0 %v273_v3  ;;  %v256_v11 = vld [vmem:[%s656_s4] sm:$0xff]  ;;  %v257_v14 = vld [vmem:[%s656_s4 + $0x8] sm:$0xff] }
  0x11   : > { %260 = vperm.xlu2 %520, %v256_v11   ;;  %v348_v33 = vld [vmem:[%s655_s3] sm:$0xff]  ;;  %v349_v34 = vld [vmem:[%s655_s3 + $0x8] sm:$0xff] }
  0x12   : > { %488 = vmatpush.msra.mxu2 %v272_v4  ;;  %326 = vmatpush.msra.mxu0 %v272_v4 }
  0x13   : > { %479 = vmatmul.msk.f32.vlgmr.msra.gmra.mxu2 %vm298_vm0, %v270_v5  ;;  %477 = vmatmul.msk.f32.vlgmr.msra.gmra.mxu0 %vm298_vm0, %v268_v6 }
  0x16   : > { %290 = vperm.xlu0 %518, %v276_v7   ;;  %280 = vperm.xlu1 %519, %v274_v8  }
  0x19   : > { %265 = vperm.xlu2 %520, %v257_v14  }
  0x1b   : > { %480 = vmatmul.msk.f32.gmra.mxu2 %vm298_vm0, %v271_v9  ;;  %478 = vmatmul.msk.f32.gmra.mxu0 %vm298_vm0, %v269_v10 }
  0x6b   : > { %v261_v35 = vpop.permute.xlu2 %260 }
  0x73   : > { %v266_v38 = vpop.permute.xlu2 %265 }
  0x80   : > { %v296_v12 = vpop.permute.xlu0 %295  ;;  %v286_v15 = vpop.permute.xlu1 %285 }
  0x88   : > { %v291_v17 = vpop.permute.xlu0 %290  ;;  %v281_v20 = vpop.permute.xlu1 %280 }
  0x90   : > { %v328_v13 = vpop.f32.mrf.mxu0 }
  0x91   : > { %v329_v25 = vadd.f32 %v328_v13, %v281_v20 }
  0x93   : > { %v340_v29 = vmax.f32 %v329_v25, 0.0 }
  0x95   : > { %v344_v32 = vmin.f32 %v340_v29, 6.0 }
  0x96   : > { %v334_v16 = vpop.f32.mrf.mxu2 }
  0x97   : > { %v335_v19 = vadd.f32 %v334_v16, %v291_v17 }
  0x98   : > { %v331_v18 = vpop.f32.mrf.mxu0 }
  0x99   : > { %v332_v22 = vadd.f32 %v331_v18, %v286_v15  ;;  %v342_v24 = vmax.f32 %v335_v19, 0.0 }
  0x9b   : > { %v341_v27 = vmax.f32 %v332_v22, 0.0  ;;  %v346_v30 = vmin.f32 %v342_v24, 6.0 }
  0x9d   : > { %v345_v31 = vmin.f32 %v341_v27, 6.0 }
  0x9e   : > { %v337_v21 = vpop.f32.mrf.mxu2 }
  0x9f   : > { %v338_v23 = vadd.f32 %v337_v21, %v296_v12 }
  0xa1   : > { %v343_v26 = vmax.f32 %v338_v23, 0.0 }
  0xa3   : > { %v347_v28 = vmin.f32 %v343_v26, 6.0 }
  0xa5   : > { %369 = vmatpush.msra.mxu1 %v347_v28  ;;  %489 = vmatpush.msra.mxu3 %v347_v28 }
  0xa7   : > { %370 = vmatpush.msra.mxu1 %v346_v30  ;;  %490 = vmatpush.msra.mxu3 %v346_v30 }
  0xa9   : > { %371 = vmatpush.msra.mxu1 %v345_v31  ;;  %491 = vmatpush.msra.mxu3 %v345_v31 }
  0xab   : > { %372 = vmatpush.msra.mxu1 %v344_v32  ;;  %492 = vmatpush.msra.mxu3 %v344_v32 }
  0xac   : > { %481 = vmatmul.msk.f32.vlgmr.msra.gmra.mxu1 %vm350_vm1, %v348_v33  ;;  %482 = vmatmul.msk.f32.vlgmr.msra.gmra.mxu3 %vm350_vm1, %v349_v34 }
 0x129   : > { %v374_v36 = vpop.f32.mrf.mxu1 }
 0x12a   : > { %v380_v37 = vadd.f32 %v374_v36, %v261_v35 }
 0x12c   : > { %383 = vst.msk [vmem:[%s255_s7] sm:$0xff] %vm382_vm2, %v380_v37 }
 0x12f   : > { %v377_v39 = vpop.f32.mrf.mxu3 }
 0x130   : > { %v381_v40 = vadd.f32 %v377_v39, %v266_v38 }
 0x132   : > { %384 = vst.msk [vmem:[%s255_s7 + $0x8] sm:$0xff] %vm382_vm2, %v381_v40 }
 0x133 PF: > { %s15_s20 = sadd.s32 1, %s543_s20   ;;  %s658_s18 = smov %s539_s19 }
 0x134   : > { %p12_p5 = scmp.ge.s32.totalorder %s15_s20, 4   ;;  %s659_s19 = smov %s661_s21 }
 0x136   :  { %14 = sbr.rel (!%p12_p5) target bundleno = 2 (0x2), region = 70 }

</bundles_post_ra>
